<compile_context>
chip_gen: v5e
topology: v5e:2x2
jax: 0.10.0
libtpu: 0.0.40
codegen_flags: <defaults>
</compile_context>

<pallas_src>
import functools

import jax
import jax.numpy as jnp
from jax import lax
from jax.experimental import pallas as pl
from jax.experimental.pallas import tpu as pltpu

EPS = 1e-5


def _conv_stats_kernel(x_ref, w_ref, m_ref, y_ref, stats_ref, *, H, W, K, p):
    """Conv('same', no bias) for one (image, Cout tile) + BN partial stats.

    x_ref:     (1, Cinp, H*W)    image, lane-dense flattened spatial axis
    w_ref:     (tc, K*K*Cinp)    weight tile, contraction order (kh, kw, c)
    m_ref:     (K*K, 1, H*W)     per-tap 'same'-padding validity masks
    y_ref:     (1, tc, H*W)      conv output tile (inter_dtype)
    stats_ref: (1, tc, 2)        per-image per-channel [sum, centered M2]
    """
    hw = H * W
    xf = x_ref[0]                                           # (Cinp, HW)

    # im2col in flattened HW space: each tap is a lane roll (XLU) of xf with
    # the 'same'-padding border masked to zero; taps stack sublane-aligned
    # into the (K*K*Cinp, HW) patch.  No zero-pad / relayout copies.
    taps = []
    for t in range(K * K):
        kh, kw = divmod(t, K)
        shift = (kh - p) * W + (kw - p)
        if shift % hw == 0:
            rolled = xf
        else:
            rolled = pltpu.roll(xf, shift=(-shift) % hw, axis=1)
        taps.append(rolled * m_ref[t])                      # (Cinp, HW)
    patch = jnp.concatenate(taps, axis=0)                   # (K*K*Cinp, HW)

    # Single MXU contraction: (tc, K*K*Cinp) @ (K*K*Cinp, HW) -> (tc, HW).
    # TODO(synk): on v7x, K*K split matmuls accumulated in the MRB would skip
    # materializing the patch; the folded single-drain form is right for
    # v5e/v6e (MRF result path).
    yt = lax.dot_general(w_ref[...], patch,
                         dimension_numbers=(((1,), (0,)), ((), ())),
                         preferred_element_type=jnp.float32)

    y_ref[0] = yt.astype(y_ref.dtype)

    # Per-image partial statistics (sum, centered M2), reduced from the f32
    # accumulator before the narrowing cast; combined across images in the
    # wrapper with Chan's parallel-variance formula (exact biased variance).
    s = jnp.sum(yt, axis=1, keepdims=True)                  # (tc, 1)
    mu = s * (1.0 / hw)
    d = yt - mu
    m2 = jnp.sum(d * d, axis=1, keepdims=True)              # (tc, 1)
    stats_ref[0] = jnp.concatenate([s, m2], axis=1)         # (tc, 2)


def _bn_relu_kernel(y_ref, scale_ref, shift_ref, o_ref):
    """Folded BatchNorm affine + ReLU on a lane-dense (Cout, HW-tile) block."""
    y = y_ref[0].astype(jnp.float32)                        # (Cout, thw)
    z = y * scale_ref[...] + shift_ref[...]                 # (Cout,1) bcast
    o_ref[0] = jnp.maximum(z, 0.0).astype(o_ref.dtype)


def _pick_hw_tile(hw):
    if hw <= 2048:
        return hw
    for t in (2048, 1024, 512, 256, 128):
        if hw % t == 0:
            return t
    return hw


def up_basic_conv_block(x_nchw, weight, bias, gamma, beta, *,
                        inter_dtype=jnp.bfloat16):
    """x_nchw: (N, Cin, H, W); weight: (Cout, Cin, K, K)  (PyTorch layouts)."""
    N, Cin, H, W = x_nchw.shape
    Cout, _, K, _ = weight.shape
    p = K // 2
    HW = H * W
    KK = K * K

    # Conv bias cancels exactly under training-mode BatchNorm -> dropped.
    del bias

    # Pad Cin to a sublane multiple (8): keeps the in-kernel tap stacking
    # aligned.  Padded weight columns are zero -> result unchanged.
    Cinp = (Cin + 7) // 8 * 8
    x_flat = x_nchw.reshape(N, Cin, HW)                     # free reshape
    if Cinp != Cin:
        x_flat = jnp.concatenate(
            [x_flat, jnp.zeros((N, Cinp - Cin, HW), x_nchw.dtype)], axis=1)
        weight = jnp.concatenate(
            [weight, jnp.zeros((Cout, Cinp - Cin, K, K), weight.dtype)],
            axis=1)

    # Weight in contraction order (kh, kw, c) to match the patch rows;
    # native input dtype feeds the MXU (f32 accumulation via
    # preferred_element_type in the kernel).
    w2 = jnp.transpose(weight, (0, 2, 3, 1)).reshape(Cout, KK * Cinp)
    w2 = w2.astype(x_nchw.dtype)

    # Per-tap validity masks over the flattened H*W axis ('same' padding).
    hh = jnp.arange(H)[:, None]
    ww = jnp.arange(W)[None, :]
    mask_list = []
    for kh in range(K):
        for kw in range(K):
            dh, dw = kh - p, kw - p
            valid = ((hh + dh >= 0) & (hh + dh < H)
                     & (ww + dw >= 0) & (ww + dw < W))
            mask_list.append(valid.reshape(1, HW))
    masks = jnp.stack(mask_list, axis=0).astype(x_nchw.dtype)  # (KK, 1, HW)

    # Cout tiling: bounds VMEM at production channel counts and gives a
    # second "parallel" grid axis (v7x megacore) even when N is 1 or odd.
    tc = Cout if Cout <= 256 else 256
    assert Cout % tc == 0
    n_ct = Cout // tc

    # Explicit VMEM budgeting (v7x: 64 MiB physical / 32 MiB scoped default).
    xb = jnp.dtype(x_nchw.dtype).itemsize
    yb = jnp.dtype(inter_dtype).itemsize
    est = (2 * Cinp * HW * xb            # x block (double buffered)
           + 2 * tc * KK * Cinp * xb     # weight tile
           + 2 * KK * HW * xb            # masks
           + KK * Cinp * HW * xb         # im2col patch
           + tc * HW * 4                 # f32 matmul result
           + 2 * tc * HW * yb)           # yconv block (double buffered)
    vmem_limit = int(min(48 * 2**20, max(24 * 2**20, 2 * est)))

    conv_kernel = functools.partial(_conv_stats_kernel, H=H, W=W, K=K, p=p)

    yconv, stats = pl.pallas_call(
        conv_kernel,
        out_shape=(jax.ShapeDtypeStruct((N, Cout, HW), inter_dtype),
                   jax.ShapeDtypeStruct((N, Cout, 2), jnp.float32)),
        grid=(N, n_ct),
        in_specs=[
            pl.BlockSpec((1, Cinp, HW), lambda n, j: (n, 0, 0)),
            pl.BlockSpec((tc, KK * Cinp), lambda n, j: (j, 0)),
            pl.BlockSpec((KK, 1, HW), lambda n, j: (0, 0, 0)),
        ],
        out_specs=(
            pl.BlockSpec((1, tc, HW), lambda n, j: (n, j, 0)),
            pl.BlockSpec((1, tc, 2), lambda n, j: (n, j, 0)),
        ),
        compiler_params=pltpu.CompilerParams(
            dimension_semantics=("parallel", "parallel"),
            vmem_limit_bytes=vmem_limit),
    )(x_flat, w2, masks)

    # Tiny (N, Cout) cross-image combine of BN statistics (Chan's formula,
    # equal group sizes) -> exact, stable biased training-mode variance.
    m = float(HW)
    local_sum = stats[:, :, 0]                               # (N, Cout)
    local_m2 = stats[:, :, 1]                                # (N, Cout)
    local_mean = local_sum / m
    mean = jnp.mean(local_mean, axis=0)                      # (Cout,)
    tot_m2 = (jnp.sum(local_m2, axis=0)
              + m * jnp.sum((local_mean - mean[None, :]) ** 2, axis=0))
    var = tot_m2 / (N * m)

    scale_vec = gamma.astype(jnp.float32) * lax.rsqrt(var + EPS)
    shift_vec = beta.astype(jnp.float32) - mean * scale_vec
    scale = scale_vec.reshape(Cout, 1)
    shift = shift_vec.reshape(Cout, 1)

    # Phase 2: lane-dense HW-tiled blocks (>=128 lanes, bounded VMEM at
    # production H*W), second "parallel" grid axis.
    thw = _pick_hw_tile(HW)
    n_hw = HW // thw

    out_flat = pl.pallas_call(
        _bn_relu_kernel,
        out_shape=jax.ShapeDtypeStruct((N, Cout, HW), x_nchw.dtype),
        grid=(N, n_hw),
        in_specs=[
            pl.BlockSpec((1, Cout, thw), lambda n, h: (n, 0, h)),
            pl.BlockSpec((Cout, 1), lambda n, h: (0, 0)),
            pl.BlockSpec((Cout, 1), lambda n, h: (0, 0)),
        ],
        out_specs=pl.BlockSpec((1, Cout, thw), lambda n, h: (n, 0, h)),
        compiler_params=pltpu.CompilerParams(
            dimension_semantics=("parallel", "parallel"),
            vmem_limit_bytes=32 * 2**20),
    )(yconv, scale, shift)
    # TODO(synk): when inter_dtype == x.dtype, alias yconv to the phase-2
    # output (input_output_aliases={0: 0}) to drop the second HBM buffer.

    # (N, Cout, H*W) -> (N, Cout, H, W): identical row-major layout, free.
    return out_flat.reshape(N, Cout, H, W)


def _reference(x_nchw, weight, bias, gamma, beta):
    """Pure-JAX reference matching PyTorch semantics (NCHW)."""
    K = weight.shape[-1]
    p = K // 2
    y = lax.conv_general_dilated(
        x_nchw, weight,
        window_strides=(1, 1), padding=((p, p), (p, p)),
        dimension_numbers=("NCHW", "OIHW", "NCHW"))
    y = y + bias[None, :, None, None]
    mean = jnp.mean(y, axis=(0, 2, 3), keepdims=True)
    var = jnp.mean((y - mean) ** 2, axis=(0, 2, 3), keepdims=True)
    y = (y - mean) * lax.rsqrt(var + EPS)
    y = y * gamma[None, :, None, None] + beta[None, :, None, None]
    return jnp.maximum(y, 0.0)


if __name__ == "__main__":
    N, Cin, H, W = 2, 4, 16, 16
    Cout, K = 8, 3

    key = jax.random.PRNGKey(0)
    kx, kw, kb = jax.random.split(key, 3)

    x = jax.random.normal(kx, (N, Cin, H, W), jnp.float32)
    # Deterministic synthetic parameters (shapes per nn.Conv2d / nn.BatchNorm2d).
    weight = 0.1 * jax.random.normal(kw, (Cout, Cin, K, K), jnp.float32)
    bias = 0.05 * jax.random.normal(kb, (Cout,), jnp.float32)
    gamma = jnp.ones((Cout,), jnp.float32)   # BatchNorm2d default init
    beta = jnp.zeros((Cout,), jnp.float32)

    ref = _reference(x, weight, bias, gamma, beta)

    # Exact path (f32 intermediate): tight tolerance.
    out_f32 = up_basic_conv_block(x, weight, bias, gamma, beta,
                                  inter_dtype=jnp.float32)
    out_f32 = jax.block_until_ready(out_f32)
    assert out_f32.shape == (N, Cout, H, W)
    assert jnp.allclose(out_f32, ref, atol=1e-4, rtol=1e-4), (
        float(jnp.max(jnp.abs(out_f32 - ref))))

    # Production path (bf16 intermediate): halves the yconv HBM round trip;
    # deviation is bounded by bf16 rounding of the pre-BN activation
    # (~2^-9 relative), hence the looser tolerance.
    out_bf16 = up_basic_conv_block(x, weight, bias, gamma, beta,
                                   inter_dtype=jnp.bfloat16)
    out_bf16 = jax.block_until_ready(out_bf16)
    assert out_bf16.shape == (N, Cout, H, W)
    assert jnp.allclose(out_bf16, ref, atol=2e-2, rtol=2e-2), (
        float(jnp.max(jnp.abs(out_bf16 - ref))))

    print("KERNEL_OK")
</pallas_src>

<mosaic_0001>
module attributes {stable_mosaic.version = 11 : i64} {
  func.func @_conv_stats_kernel(%arg0: i32, %arg1: i32, %arg2: memref<1x8x256xf32, #tpu.memory_space<vmem>>, %arg3: memref<8x72xf32, #tpu.memory_space<vmem>>, %arg4: memref<9x1x256xf32, #tpu.memory_space<vmem>>, %arg5: memref<1x8x256xf32, #tpu.memory_space<vmem>>, %arg6: memref<1x8x2xf32, #tpu.memory_space<vmem>>) attributes {dimension_semantics = [#tpu.dimension_semantics<parallel>, #tpu.dimension_semantics<parallel>], iteration_bounds = array<i64: 2, 1>, scalar_prefetch = 0 : i64, scratch_operands = 0 : i64, tpu.core_type = #tpu.core_type<tc>, window_params = [{transform_indices = @transform_0, window_bounds = array<i64: 1, 8, 256>}, {transform_indices = @transform_1, window_bounds = array<i64: 8, 72>}, {pipeline_mode = #tpu.pipeline_mode<synchronous>, transform_indices = @transform_2, window_bounds = array<i64: 9, 1, 256>}, {transform_indices = @transform_3, window_bounds = array<i64: 1, 8, 256>}, {transform_indices = @transform_4, window_bounds = array<i64: 1, 8, 2>}]} {
    %c0 = arith.constant 0 : index
    %c0_0 = arith.constant 0 : index
    %c0_1 = arith.constant 0 : index
    %0 = vector.load %arg2[%c0, %c0_0, %c0_1] : memref<1x8x256xf32, #tpu.memory_space<vmem>>, vector<1x8x256xf32>
    %1 = vector.shape_cast %0 : vector<1x8x256xf32> to vector<8x256xf32>
    %c17_i32 = arith.constant 17 : i32
    %2 = tpu.dynamic_rotate %1 by %c17_i32 dim 1 : vector<8x256xf32>, i32 -> vector<8x256xf32>
    %c0_2 = arith.constant 0 : index
    %c0_3 = arith.constant 0 : index
    %c0_4 = arith.constant 0 : index
    %3 = vector.load %arg4[%c0_2, %c0_3, %c0_4] : memref<9x1x256xf32, #tpu.memory_space<vmem>>, vector<1x1x256xf32>
    %4 = vector.shape_cast %3 : vector<1x1x256xf32> to vector<1x256xf32>
    %5 = vector.broadcast %4 : vector<1x256xf32> to vector<8x256xf32>
    %6 = arith.mulf %2, %5 : vector<8x256xf32>
    %c16_i32 = arith.constant 16 : i32
    %7 = tpu.dynamic_rotate %1 by %c16_i32 dim 1 : vector<8x256xf32>, i32 -> vector<8x256xf32>
    %c1 = arith.constant 1 : index
    %c0_5 = arith.constant 0 : index
    %c0_6 = arith.constant 0 : index
    %8 = vector.load %arg4[%c1, %c0_5, %c0_6] : memref<9x1x256xf32, #tpu.memory_space<vmem>>, vector<1x1x256xf32>
    %9 = vector.shape_cast %8 : vector<1x1x256xf32> to vector<1x256xf32>
    %10 = vector.broadcast %9 : vector<1x256xf32> to vector<8x256xf32>
    %11 = arith.mulf %7, %10 : vector<8x256xf32>
    %c15_i32 = arith.constant 15 : i32
    %12 = tpu.dynamic_rotate %1 by %c15_i32 dim 1 : vector<8x256xf32>, i32 -> vector<8x256xf32>
    %c2 = arith.constant 2 : index
    %c0_7 = arith.constant 0 : index
    %c0_8 = arith.constant 0 : index
    %13 = vector.load %arg4[%c2, %c0_7, %c0_8] : memref<9x1x256xf32, #tpu.memory_space<vmem>>, vector<1x1x256xf32>
    %14 = vector.shape_cast %13 : vector<1x1x256xf32> to vector<1x256xf32>
    %15 = vector.broadcast %14 : vector<1x256xf32> to vector<8x256xf32>
    %16 = arith.mulf %12, %15 : vector<8x256xf32>
    %c1_i32 = arith.constant 1 : i32
    %17 = tpu.dynamic_rotate %1 by %c1_i32 dim 1 : vector<8x256xf32>, i32 -> vector<8x256xf32>
    %c3 = arith.constant 3 : index
    %c0_9 = arith.constant 0 : index
    %c0_10 = arith.constant 0 : index
    %18 = vector.load %arg4[%c3, %c0_9, %c0_10] : memref<9x1x256xf32, #tpu.memory_space<vmem>>, vector<1x1x256xf32>
    %19 = vector.shape_cast %18 : vector<1x1x256xf32> to vector<1x256xf32>
    %20 = vector.broadcast %19 : vector<1x256xf32> to vector<8x256xf32>
    %21 = arith.mulf %17, %20 : vector<8x256xf32>
    %c4 = arith.constant 4 : index
    %c0_11 = arith.constant 0 : index
    %c0_12 = arith.constant 0 : index
    %22 = vector.load %arg4[%c4, %c0_11, %c0_12] : memref<9x1x256xf32, #tpu.memory_space<vmem>>, vector<1x1x256xf32>
    %23 = vector.shape_cast %22 : vector<1x1x256xf32> to vector<1x256xf32>
    %24 = vector.broadcast %23 : vector<1x256xf32> to vector<8x256xf32>
    %25 = arith.mulf %1, %24 : vector<8x256xf32>
    %c255_i32 = arith.constant 255 : i32
    %26 = tpu.dynamic_rotate %1 by %c255_i32 dim 1 : vector<8x256xf32>, i32 -> vector<8x256xf32>
    %c5 = arith.constant 5 : index
    %c0_13 = arith.constant 0 : index
    %c0_14 = arith.constant 0 : index
    %27 = vector.load %arg4[%c5, %c0_13, %c0_14] : memref<9x1x256xf32, #tpu.memory_space<vmem>>, vector<1x1x256xf32>
    %28 = vector.shape_cast %27 : vector<1x1x256xf32> to vector<1x256xf32>
    %29 = vector.broadcast %28 : vector<1x256xf32> to vector<8x256xf32>
    %30 = arith.mulf %26, %29 : vector<8x256xf32>
    %c241_i32 = arith.constant 241 : i32
    %31 = tpu.dynamic_rotate %1 by %c241_i32 dim 1 : vector<8x256xf32>, i32 -> vector<8x256xf32>
    %c6 = arith.constant 6 : index
    %c0_15 = arith.constant 0 : index
    %c0_16 = arith.constant 0 : index
    %32 = vector.load %arg4[%c6, %c0_15, %c0_16] : memref<9x1x256xf32, #tpu.memory_space<vmem>>, vector<1x1x256xf32>
    %33 = vector.shape_cast %32 : vector<1x1x256xf32> to vector<1x256xf32>
    %34 = vector.broadcast %33 : vector<1x256xf32> to vector<8x256xf32>
    %35 = arith.mulf %31, %34 : vector<8x256xf32>
    %c240_i32 = arith.constant 240 : i32
    %36 = tpu.dynamic_rotate %1 by %c240_i32 dim 1 : vector<8x256xf32>, i32 -> vector<8x256xf32>
    %c7 = arith.constant 7 : index
    %c0_17 = arith.constant 0 : index
    %c0_18 = arith.constant 0 : index
    %37 = vector.load %arg4[%c7, %c0_17, %c0_18] : memref<9x1x256xf32, #tpu.memory_space<vmem>>, vector<1x1x256xf32>
    %38 = vector.shape_cast %37 : vector<1x1x256xf32> to vector<1x256xf32>
    %39 = vector.broadcast %38 : vector<1x256xf32> to vector<8x256xf32>
    %40 = arith.mulf %36, %39 : vector<8x256xf32>
    %c239_i32 = arith.constant 239 : i32
    %41 = tpu.dynamic_rotate %1 by %c239_i32 dim 1 : vector<8x256xf32>, i32 -> vector<8x256xf32>
    %c8 = arith.constant 8 : index
    %c0_19 = arith.constant 0 : index
    %c0_20 = arith.constant 0 : index
    %42 = vector.load %arg4[%c8, %c0_19, %c0_20] : memref<9x1x256xf32, #tpu.memory_space<vmem>>, vector<1x1x256xf32>
    %43 = vector.shape_cast %42 : vector<1x1x256xf32> to vector<1x256xf32>
    %44 = vector.broadcast %43 : vector<1x256xf32> to vector<8x256xf32>
    %45 = arith.mulf %41, %44 : vector<8x256xf32>
    %46 = tpu.concatenate %6, %11, %16, %21, %25, %30, %35, %40, %45 in 0 : vector<8x256xf32>, vector<8x256xf32>, vector<8x256xf32>, vector<8x256xf32>, vector<8x256xf32>, vector<8x256xf32>, vector<8x256xf32>, vector<8x256xf32>, vector<8x256xf32> -> vector<72x256xf32>
    %c0_21 = arith.constant 0 : index
    %c0_22 = arith.constant 0 : index
    %47 = vector.load %arg3[%c0_21, %c0_22] : memref<8x72xf32, #tpu.memory_space<vmem>>, vector<8x72xf32>
    %cst = arith.constant dense<0.000000e+00> : vector<8x256xf32>
    %48 = tpu.matmul %47, %46, %cst {dimension_numbers = #tpu.dot_dimension_numbers<[1], [0], [0], [1], [0, 0, 1, 1], [], []>} : vector<8x72xf32>, vector<72x256xf32>, vector<8x256xf32> -> vector<8x256xf32>
    %c0_23 = arith.constant 0 : index
    %c0_24 = arith.constant 0 : index
    %c0_25 = arith.constant 0 : index
    %49 = vector.load %arg5[%c0_23, %c0_24, %c0_25] : memref<1x8x256xf32, #tpu.memory_space<vmem>>, vector<1x8x256xf32>
    %50 = vector.shape_cast %49 : vector<1x8x256xf32> to vector<8x256xf32>
    %51 = vector.shape_cast %48 : vector<8x256xf32> to vector<1x8x256xf32>
    tpu.vector_store %arg5[%c0_23, %c0_24, %c0_25], %51 {strides = array<i32>} : memref<1x8x256xf32, #tpu.memory_space<vmem>>, vector<1x8x256xf32>,
    %cst_26 = arith.constant dense<0.000000e+00> : vector<8xf32>
    %52 = vector.multi_reduction <add>, %48, %cst_26 [1] : vector<8x256xf32> to vector<8xf32>
    %53 = vector.shape_cast %52 : vector<8xf32> to vector<8x1xf32>
    %cst_27 = arith.constant 3.906250e-03 : f32
    %54 = vector.broadcast %cst_27 : f32 to vector<8x1xf32>
    %55 = arith.mulf %53, %54 : vector<8x1xf32>
    %56 = vector.broadcast %55 : vector<8x1xf32> to vector<8x256xf32>
    %57 = arith.subf %48, %56 : vector<8x256xf32>
    %58 = arith.mulf %57, %57 : vector<8x256xf32>
    %cst_28 = arith.constant dense<0.000000e+00> : vector<8xf32>
    %59 = vector.multi_reduction <add>, %58, %cst_28 [1] : vector<8x256xf32> to vector<8xf32>
    %60 = vector.shape_cast %59 : vector<8xf32> to vector<8x1xf32>
    %61 = tpu.concatenate %53, %60 in 1 : vector<8x1xf32>, vector<8x1xf32> -> vector<8x2xf32>
    %c0_29 = arith.constant 0 : index
    %c0_30 = arith.constant 0 : index
    %c0_31 = arith.constant 0 : index
    %62 = vector.load %arg6[%c0_29, %c0_30, %c0_31] : memref<1x8x2xf32, #tpu.memory_space<vmem>>, vector<1x8x2xf32>
    %63 = vector.shape_cast %62 : vector<1x8x2xf32> to vector<8x2xf32>
    %64 = vector.shape_cast %61 : vector<8x2xf32> to vector<1x8x2xf32>
    tpu.vector_store %arg6[%c0_29, %c0_30, %c0_31], %64 {strides = array<i32>} : memref<1x8x2xf32, #tpu.memory_space<vmem>>, vector<1x8x2xf32>,
    return
  }
  func.func @transform_0(%arg0: i32, %arg1: i32) -> (i32, i32, i32) {
    %c0_i32 = arith.constant 0 : i32
    %c0_i32_0 = arith.constant 0 : i32
    %c0_i32_1 = arith.constant 0 : i32
    return %arg0, %c0_i32, %c0_i32_0 : i32, i32, i32
  }
  func.func @transform_1(%arg0: i32, %arg1: i32) -> (i32, i32) {
    %c0_i32 = arith.constant 0 : i32
    %c0_i32_0 = arith.constant 0 : i32
    return %arg1, %c0_i32 : i32, i32
  }
  func.func @transform_2(%arg0: i32, %arg1: i32) -> (i32, i32, i32) {
    %c0_i32 = arith.constant 0 : i32
    %c0_i32_0 = arith.constant 0 : i32
    %c0_i32_1 = arith.constant 0 : i32
    %c0_i32_2 = arith.constant 0 : i32
    return %c0_i32, %c0_i32_0, %c0_i32_1 : i32, i32, i32
  }
  func.func @transform_3(%arg0: i32, %arg1: i32) -> (i32, i32, i32) {
    %c0_i32 = arith.constant 0 : i32
    %c0_i32_0 = arith.constant 0 : i32
    return %arg0, %arg1, %c0_i32 : i32, i32, i32
  }
  func.func @transform_4(%arg0: i32, %arg1: i32) -> (i32, i32, i32) {
    %c0_i32 = arith.constant 0 : i32
    %c0_i32_0 = arith.constant 0 : i32
    return %arg0, %arg1, %c0_i32 : i32, i32, i32
  }
}

</mosaic_0001>

<bundles_post_ra>
// kernel: tpu_custom_call.1
= control target key start
LH: loop header
LB: loop body
LE: loop exit
PB: predicated region body
PF: predicated region fallthrough
CT: control target
= control target key end

     0   :  { %10 = vsyncpa [#allocation3], 0  ;;  %s1170_s0 = inlined_call_operand.hbm [shape: f32[2,8,256], index: 0, kind: input, shape index: {}]   ;;  %s1171_s1 = inlined_call_operand.hbm [shape: f32[8,72], index: 1, kind: input, shape index: {}]   ;;  %s1172_s2 = inlined_call_operand.hbm [shape: f32[9,1,256], index: 2, kind: input, shape index: {}]   ;;  %s1173_s3 = inlined_call_operand.hbm [shape: f32[2,8,256], index: 3, kind: output, shape index: {0}]   ;;  %s1174_s4 = inlined_call_operand.vmem [shape: f32[2,8,2], index: 4, kind: output, shape index: {1}]  }
   0x1   :  { %12 = vsyncpa [#allocation3 + $0x1], 0 }
   0x2   :  { %13 = vsyncpa [#allocation6], 0 }
   0x3   :  { %14 = vsyncpa [#allocation4], 0 }
   0x4   :  { %16 = vsyncpa [#allocation4 + $0x1], 0  ;;  %s983_s15 = smov 0   ;;  %s985_s16 = smov 0  }
   0x5   :  { %s987_s17 = smov 0   ;;  %s989_s18 = smov 0  }
   0x6   :  { %s991_s19 = smov 0   ;;  %s993_s20 = smov 0  }
   0x7 LB: > { %s651_s21 = sadd.s32 4294967295, %s944_s20   ;;  %s652_s22 = sadd.s32 4294967294, %s944_s20   ;;  %s944_s20 = sphi %s993_s20, %s22_s20   ;;  %s940_s19 = sphi %s991_s19, %s1184_s19   ;;  %s936_s18 = sphi %s989_s18, %s1183_s18   ;;  %s932_s17 = sphi %s987_s17, %s1182_s17   ;;  %s928_s16 = sphi %s985_s16, %s1181_s16   ;;  %s924_s15 = sphi %s983_s15, %s1180_s15  }
   0x8   : > { %p54_p0 = scmp.ne.s32.totalorder %s928_s16, %s924_s15  ;;  %p1019_p1 = scmp.eq.s32.totalorder %s651_s21, 0 }
   0x9   : > { %p133_p2 = scmp.eq.s32.totalorder %s652_s22, 1  ;;  %p653_p4 = scmp.ge.s32.totalorder %s944_s20, 1 }
   0xa   : > { %p1025_p3 = por %p1019_p1, %p54_p0  ;;  %p168_p6 = scmp.lt.s32.totalorder %s944_s20, 3 }
   0xb   : > { %p1030_p5 = por %p133_p2, %p54_p0  ;;  %s182_s28 = sshll.u32 %s1171_s1, 4  ;;  %s183_s28 = int_to_ptr.hbm [resolvable:$true] %s182_s28 }
   0xc   : > { %p1038_p7 = pnand %p653_p4, %p168_p6  ;;  %p656_p8 = scmp.ge.s32.totalorder %s944_s20, 2 }
   0xd   : > { %s946_s30 = smov [#allocation5]   ;;  %s193_s8 = sshll.u32 %s1172_s2, 4  ;;  %s194_s8 = int_to_ptr.hbm [resolvable:$true] %s193_s8 }
   0xe   : > { %p687_p9 = pneg %p1038_p7  ;;  %s184_s5 = sshll.u32 %s946_s30, 4  ;;  %s185_s5 = int_to_ptr.vmem [resolvable:$true] %s184_s5 }
   0xf   : > { %s947_s9 = smov [#allocation7]   ;;  %s948_s11 = smov 32  }
  0x10   : > { %p688_p10 = pnand %p687_p9, %p1019_p1  ;;  %s195_s10 = sshll.u32 %s947_s9, 4  ;;  %s196_s10 = int_to_ptr.vmem [resolvable:$true] %s195_s10 }
  0x11   : > { %s949_s12 = smov 2   ;;  %p127_p11 = scmp.eq.s32.totalorder %s651_s21, 1 }
  0x12   : > { %690 = dma.hbm_to_vmem [thread:$0]  (!%p688_p10), %s183_s28, 128, %s185_s5, [#allocation6]  }
  0x13   : > { %693 = dma.hbm_to_vmem [thread:$0]  (!%p688_p10), %s194_s8, 288, %s196_s10, [#allocation6], %s948_s11, %s948_s11, %s949_s12  }
  0x14   : > { %s34_s13 = sadd.s32 1, %s940_s19  ;;  %s41_s14 = sadd.s32 1, %s932_s17 }
  0x15   : > { %p36_p12 = scmp.ge.s32.totalorder %s34_s13, 2  ;;  %p48_p13 = scmp.ne.s32.totalorder %s932_s17, %s928_s16 }
  0x16   : > { %p49_p0 = scmp.eq.s32.totalorder %s944_s20, 0  ;;  %p704_p4 = scmp.lt.s32.totalorder %s944_s20, 2 }
  0x17   : > { %s1186_s13 = smov (%p36_p12, %s34_s13), 0  ;;  %p1059_p2 = por %p127_p11, %p48_p13 }
  0x18   : > { %s38_s26 = ssub.s32 %s940_s19, %s1186_s13  ;;  %s209_s27 = sand.u32 1, %s932_s17  }
  0x19   : > { %p39_p6 = scmp.eq.s32.totalorder %s38_s26, 0  ;;  %p50_p9 = por %p49_p0, %p48_p13 }
  0x1a   : > { %s657_s28 = sshll.u32 %s209_s27, 4  ;;  %s673_s21 = sshll.u32 %s940_s19, 4 }
  0x1b   : > { %s1069_s30 = scalar_select %p39_p6, %s932_s17, %s41_s14  }
  0x1c   : > { %s218_s7 = scalar_lea.hbm %s1170_s0, %s673_s21  ;;  %s213_s9 = scalar_lea.vmem [#allocation2], %s657_s28 }
  0x1d   : > { %s220_s8 = sshll.u32 %s218_s7, 4  ;;  %s222_s10 = sshll.u32 %s213_s9, 4  ;;  %s221_s8 = int_to_ptr.hbm [resolvable:$true] %s220_s8  ;;  %s223_s10 = int_to_ptr.vmem [resolvable:$true] %s222_s10 }
  0x1e   : > { %p695_p10 = pnand %p704_p4, %p50_p9  ;;  %s210_s11 = scalar_lea.sflag [#allocation3], %s209_s27 }
  0x1f   : > { %231 = sbr.rel (%p1038_p7) target bundleno = 569 (0x239), region = 32  ;;  %s1079_s12 = sand.u32 (!%p1038_p7), 1, %s928_s16  }
  0x20   : > { %697 = dma.hbm_to_vmem [thread:$0]  (!%p695_p10), %s221_s8, 256, %s223_s10, %s210_s11  }
  0x21   : > { %s661_s14 = sshll.u32 (!%p1038_p7), %s1079_s12, 4  ;;  %s234_s26 = scalar_lea.sflag (!%p1038_p7), [#allocation3], %s1079_s12 }
  0x22   : > { %s237_s28 = scalar_lea.vmem (!%p1038_p7), [#allocation2], %s661_s14 }
  0x24   : > { %911 = dma.done.wait (%p1025_p3), %s234_s26, 256  }
  0x25   : > { %913 = vsyncadd (%p1025_p3), %s234_s26, 4294967040 }
  0x26   : > { %915 = dma.done.wait (%p1019_p1), [#allocation6], 416  }
  0x27   : > { %917 = vsyncadd (%p1019_p1), [#allocation6], 4294966880  ;;  %v1093_v0 = vld [vmem:[%s237_s28] sm:$0xff]  ;;  %s950_s29 = smov 112   ;;  %s951_s27 = smov 111   ;;  %v1098_v1 = vld [vmem:[%s237_s28 + $0x8] sm:$0xff]  ;;  %v293_v3 = vlaneseq }
  0x28   : > { %395 = vrot.lane.b32.xlu1 %v1093_v0, %s950_s29  ;;  %411 = vrot.lane.b32.xlu0 %v1093_v0, %s951_s27  ;;  %s952_s21 = smov 113   ;;  %s953_s23 = smov 127   ;;  %v419_v7 = vld [vmem:[#allocation7 + $0x10] sm:$0x3]  ;;  %v403_v9 = vld [vmem:[#allocation7 + $0xe] sm:$0x3] }
  0x29   : > { %379 = vrot.lane.b32.xlu2 %v1093_v0, %s952_s21  ;;  %s954_s24 = smov 1   ;;  %s955_s5 = smov 15   ;;  %v1113_v6 = vand.u32 127, %v293_v3  ;;  %v421_v10 = vperm.slane %v419_v7, 0  ;;  %v422_v11 = vperm.slane %v419_v7, 1  ;;  %v405_v15 = vperm.slane %v403_v9, 0 }
  0x2a   : > { %s956_s6 = smov 16   ;;  %s957_s7 = smov 17   ;;  %v387_v12 = vld [vmem:[#allocation7 + $0xc] sm:$0x3]  ;;  %v406_v16 = vperm.slane %v403_v9, 1  ;;  %vm428_vm8 = vcmask 588800  }
  0x2b   : > { %vm399_vm0 = vcmp.lt.s32.totalorder %v1113_v6, 112  ;;  %vm415_vm1 = vcmp.lt.s32.totalorder %v1113_v6, 111  ;;  %vm383_vm2 = vcmp.lt.s32.totalorder %v1113_v6, 113  ;;  %v389_v23 = vperm.slane %v387_v12, 0  ;;  %v371_v25 = vld [vmem:[#allocation7 + $0xa] sm:$0x3] }
  0x2c   : > { %v390_v24 = vperm.slane %v387_v12, 1  ;;  %v355_v28 = vld [vmem:[#allocation7 + $0x8] sm:$0x3]  ;;  %vm367_vm3 = vcmp.lt.s32.totalorder %v1113_v6, 127  ;;  %v373_v32 = vperm.slane %v371_v25, 0  ;;  %v374_v33 = vperm.slane %v371_v25, 1 }
  0x2d   : > { %v357_v36 = vperm.slane %v355_v28, 0  ;;  %v358_v37 = vperm.slane %v355_v28, 1  ;;  %v346_v46 = vld [vmem:[#allocation7 + $0x6] sm:$0x3]  ;;  %v330_v47 = vld [vmem:[#allocation7 + $0x4] sm:$0x3] }
  0x2e   : > { %vm342_vm4 = vcmp.lt.s32.totalorder %v1113_v6, 1  ;;  %v348_v48 = vperm.slane %v346_v46, 0  ;;  %v349_v49 = vperm.slane %v346_v46, 1  ;;  %vm326_vm5 = vcmp.lt.s32.totalorder %v1113_v6, 15  ;;  %v314_v63 = vld [vmem:[#allocation7 + $0x2] sm:$0x3] }
  0x2f   : > { %v361_v44 = vmul.f32 %v357_v36, %v1093_v0  ;;  %v362_v45 = vmul.f32 %v358_v37, %v1098_v1  ;;  %v332_v51 = vperm.slane %v330_v47, 0  ;;  %v333_v52 = vperm.slane %v330_v47, 1  ;;  %v298_v9 = vld [vmem:[#allocation7] sm:$0x3]  ;;  %s270_s8 = scalar_lea.vmem [#allocation8], %s661_s14  ;;  %s674_s10 = sshll.u32 %s936_s18, 4 }
  0x30   : > { %397 = vrot.lane.b32.xlu1 %v1098_v1, %s950_s29  ;;  %413 = vrot.lane.b32.xlu0 %v1098_v1, %s951_s27  ;;  %vm310_vm6 = vcmp.lt.s32.totalorder %v1113_v6, 16  ;;  %vm295_vm7 = vcmp.lt.s32.totalorder %v1113_v6, 17  ;;  %v301_v12 = vperm.slane %v298_v9, 1  ;;  %s512_s9 = sshll.u32 %s270_s8, 4  ;;  %s510_s28 = scalar_lea.hbm %s1173_s3, %s674_s10  ;;  %s513_s9 = int_to_ptr.vmem [resolvable:$true] %s512_s9 }
  0x31   : > { %381 = vrot.lane.b32.xlu2 %v1098_v1, %s952_s21  ;;  %s514_s29 = sshll.u32 %s510_s28, 4  ;;  %s490_s27 = scalar_lea.sflag [#allocation4], %s1079_s12  ;;  %s515_s29 = int_to_ptr.hbm [resolvable:$true] %s514_s29 }
  0x32   : > { %s872_s21 = sshra.s32 %s515_s29, 4  ;;  %s873_s21 = int_to_ptr.hbm [resolvable:$true] %s872_s21 }
  0x33   : > { %p879_p11 = scmp.lt.s32.totalorder %s873_s21, %s1173_s3 }
  0x38   : > { %365 = vrot.lane.b32.xlu1 %v1098_v1, %s953_s23  ;;  %363 = vrot.lane.b32.xlu0 %v1093_v0, %s953_s23  ;;  %s874_s23 = scalar_lea.hbm %s873_s21, 16 }
  0x39   : > { %338 = vrot.lane.b32.xlu2 %v1093_v0, %s954_s24  ;;  %p875_p1 = scmp.ne.s32.totalorder %s873_s21, %s874_s23 }
  0x3b   : > { %p876_p3 = pnand %p875_p1, %p1059_p2 }
  0x3d   : > { %p877_p7 = pneg %p876_p3 }
  0x40   : > { %322 = vrot.lane.b32.xlu1 %v1093_v0, %s955_s5  ;;  %340 = vrot.lane.b32.xlu0 %v1098_v1, %s954_s24 }
  0x41   : > { %324 = vrot.lane.b32.xlu2 %v1098_v1, %s955_s5  ;;  %s878_s5 = scalar_lea.hbm %s1173_s3, 32 }
  0x42   : > { %p880_p12 = scmp.lt.s32.totalorder %s878_s5, %s874_s23 }
  0x44   : > { %p881_p13 = por %p880_p12, %p879_p11 }
  0x46   : > { %p882_p0 = pnand %p881_p13, %p877_p7 }
  0x48   : > { %308 = vrot.lane.b32.xlu1 %v1098_v1, %s956_s6  ;;  %306 = vrot.lane.b32.xlu0 %v1093_v0, %s956_s6 }
  0x49   : > { %289 = vrot.lane.b32.xlu2 %v1093_v0, %s957_s7  ;;  %v316_v0 = vperm.slane %v314_v63, 0 }
  0x50   : > { %291 = vrot.lane.b32.xlu0 %v1098_v1, %s957_s7  ;;  %v317_v1 = vperm.slane %v314_v63, 1 }
  0x83   : > { %v380_v2 = vpop.permute.xlu2 %379 }
  0x8b   : > { %v382_v8 = vpop.permute.xlu2 %381 }
  0x8c   : > { %v384_v26 = vsel %vm383_vm2, %v380_v2, %v382_v8  ;;  %v385_v27 = vsel %vm383_vm2, %v382_v8, %v380_v2 }
  0x8d   : > { %v393_v34 = vmul.f32 %v389_v23, %v384_v26  ;;  %v394_v35 = vmul.f32 %v390_v24, %v385_v27 }
  0x93   : > { %v339_v31 = vpop.permute.xlu2 %338 }
  0x9a   : > { %v396_v4 = vpop.permute.xlu1 %395  ;;  %v412_v5 = vpop.permute.xlu0 %411 }
  0x9b   : > { %v325_v50 = vpop.permute.xlu2 %324 }
  0xa2   : > { %v398_v13 = vpop.permute.xlu1 %397  ;;  %v414_v14 = vpop.permute.xlu0 %413 }
  0xa3   : > { %v400_v17 = vsel %vm399_vm0, %v396_v4, %v398_v13  ;;  %v401_v18 = vsel %vm399_vm0, %v398_v13, %v396_v4  ;;  %v416_v19 = vsel %vm415_vm1, %v412_v5, %v414_v14  ;;  %v417_v20 = vsel %vm415_vm1, %v414_v14, %v412_v5 }
  0xa4   : > { %v425_v21 = vmul.f32 %v421_v10, %v416_v19  ;;  %v426_v22 = vmul.f32 %v422_v11, %v417_v20  ;;  %v409_v29 = vmul.f32 %v405_v15, %v400_v17  ;;  %v410_v30 = vmul.f32 %v406_v16, %v401_v18  ;;  %v290_v10 = vpop.permute.xlu2 %289  ;;  %v427_v18 = vld [vmem:[#allocation5] sm:$0xff] }
  0xa5   : > { %v300_v11 = vperm.slane %v298_v9, 0 }
  0xa6   : > { %439 = vmatpush.msra.mxu0 %v425_v21  ;;  %459 = vmatpush.msra.mxu1 %v426_v22 }
  0xa8   : > { %440 = vmatpush.msra.mxu0 %v409_v29  ;;  %460 = vmatpush.msra.mxu1 %v410_v30 }
  0xaa   : > { %v366_v38 = vpop.permute.xlu1 %365  ;;  %441 = vmatpush.msra.mxu0 %v393_v34  ;;  %461 = vmatpush.msra.mxu1 %v394_v35  ;;  %v364_v39 = vpop.permute.xlu0 %363 }
  0xab   : > { %v368_v40 = vsel %vm367_vm3, %v364_v39, %v366_v38  ;;  %v369_v41 = vsel %vm367_vm3, %v366_v38, %v364_v39 }
  0xac   : > { %v377_v42 = vmul.f32 %v373_v32, %v368_v40  ;;  %v378_v43 = vmul.f32 %v374_v33, %v369_v41 }
  0xae   : > { %442 = vmatpush.msra.mxu0 %v377_v42  ;;  %462 = vmatpush.msra.mxu1 %v378_v43 }
  0xb0   : > { %443 = vmatpush.msra.mxu0 %v361_v44  ;;  %463 = vmatpush.msra.mxu1 %v362_v45 }
  0xb2   : > { %v323_v53 = vpop.permute.xlu1 %322  ;;  %v341_v54 = vpop.permute.xlu0 %340 }
  0xb3   : > { %v343_v55 = vsel %vm342_vm4, %v339_v31, %v341_v54  ;;  %v344_v56 = vsel %vm342_vm4, %v341_v54, %v339_v31  ;;  %v327_v57 = vsel %vm326_vm5, %v323_v53, %v325_v50  ;;  %v328_v58 = vsel %vm326_vm5, %v325_v50, %v323_v53 }
  0xb4   : > { %v352_v59 = vmul.f32 %v348_v48, %v344_v56  ;;  %v353_v60 = vmul.f32 %v349_v49, %v343_v55  ;;  %v336_v61 = vmul.f32 %v332_v51, %v328_v58  ;;  %v337_v62 = vmul.f32 %v333_v52, %v327_v57 }
  0xb6   : > { %444 = vmatpush.msra.mxu0 %v352_v59  ;;  %464 = vmatpush.msra.mxu1 %v353_v60 }
  0xb8   : > { %445 = vmatpush.msra.mxu0 %v336_v61  ;;  %465 = vmatpush.msra.mxu1 %v337_v62 }
  0xba   : > { %v309_v2 = vpop.permute.xlu1 %308  ;;  %v307_v3 = vpop.permute.xlu0 %306 }
  0xbb   : > { %v311_v4 = vsel %vm310_vm6, %v307_v3, %v309_v2  ;;  %v312_v5 = vsel %vm310_vm6, %v309_v2, %v307_v3 }
  0xbc   : > { %v320_v7 = vmul.f32 %v316_v0, %v312_v5  ;;  %v321_v8 = vmul.f32 %v317_v1, %v311_v4 }
  0xbe   : > { %446 = vmatpush.msra.mxu0 %v320_v7  ;;  %466 = vmatpush.msra.mxu1 %v321_v8 }
  0xc2   : > { %v292_v13 = vpop.permute.xlu0 %291 }
  0xc3   : > { %v296_v14 = vsel %vm295_vm7, %v290_v10, %v292_v13  ;;  %v297_v15 = vsel %vm295_vm7, %v292_v13, %v290_v10 }
  0xc4   : > { %v304_v16 = vmul.f32 %v300_v11, %v297_v15  ;;  %v305_v17 = vmul.f32 %v301_v12, %v296_v14 }
  0xc6   : > { %447 = vmatpush.msra.mxu0 %v304_v16  ;;  %467 = vmatpush.msra.mxu1 %v305_v17 }
  0xc7   : > { %666 = vmatmul.msk.f32.vlgmr.msra.gmra.mxu0 %vm428_vm8, %v427_v18  ;;  %667 = vmatmul.msk.f32.vlgmr.msra.gmra.mxu1 %vm428_vm8, %v427_v18 }
 0x144   : > { %v449_v19 = vpop.f32.mrf.mxu0  ;;  %v469_v20 = vpop.f32.mrf.mxu1 }
 0x145   : > { %472 = vst [vmem:[%s270_s8] sm:$0xff] %v449_v19  ;;  %v474_v6 = vadd.f32 %v469_v20, %v449_v19 }
 0x146   : > { %473 = vst [vmem:[%s270_s8 + $0x8] sm:$0xff] %v469_v20 }
 0x147   : > { %475 = vadd.xlane.f32.xlu1 %v474_v6 }
 0x148   : > { %885 = shalt.err (!%p882_p0)
}
 0x149   : > { %685 = dma.vmem_to_hbm [thread:$0]  (%p1059_p2), %s513_s9, 256, %s515_s29, %s490_s27   ;;  %vm485_vm9 = vcmask 7168   ;;  %vm487_vm10 = vcmask 15360  }
 0x14a   : > { %p280_p4 = scmp.lt.s32.totalorder %s936_s18, 1 }
 0x14c   : > { %s1188_s18 = smov (!%p280_p4, %s936_s18), 1 }
 0x14d   : > { %s665_s12 = sshll.u32 %s1188_s18, 3 }
 0x14e   : > { %s286_s11 = scalar_lea.vmem %s1174_s4, %s665_s12 }
 0x1ba   : > { %v476_v21 = vpop.xlane.xlu1 %475 }
 0x1bb   : > { %v477_v22 = vmul.f32 0.00390625, %v476_v21 }
 0x1bd   : > { %v478_v23 = vsub.f32 %v449_v19, %v477_v22  ;;  %v479_v24 = vsub.f32 %v469_v20, %v477_v22 }
 0x1bf   : > { %v480_v25 = vmul.f32 %v478_v23, %v478_v23  ;;  %v481_v26 = vmul.f32 %v479_v24, %v479_v24 }
 0x1c1   : > { %v482_v27 = vadd.f32 %v481_v26, %v480_v25 }
 0x1c3   : > { %483 = vadd.xlane.f32.xlu2 %v482_v27 }
 0x236   : > { %v484_v28 = vpop.xlane.xlu2 %483 }
 0x237   : > { %v486_v29 = vsel %vm485_vm9, %v476_v21, %v484_v28 }
 0x238   : > { %488 = vst.msk [vmem:[%s286_s11] sm:$0xff] %vm487_vm10, %v486_v29 }
 0x239 PF: > { %s529_s22 = sand.u32 1, %s924_s15   ;;  %p699_p2 = pnand %p656_p8, %p1030_p5 }
 0x23a   : > { %s530_s9 = scalar_lea.sflag [#allocation4], %s529_s22 }
 0x23b   : > { %p700_p6 = pneg %p699_p2 }
 0x23d   : > { %919 = dma.done.wait (%p700_p6), %s530_s9, 256  }
 0x23e   : > { %921 = vsyncadd (%p700_p6), %s530_s9, 4294967040  ;;  %s22_s20 = sadd.s32 1, %s944_s20   ;;  %s1180_s15 = smov %s928_s16 }
 0x23f   : > { %p19_p9 = scmp.ge.s32.totalorder %s22_s20, 4   ;;  %s1181_s16 = smov %s932_s17 }
 0x240   : > { %s1182_s17 = smov %s1069_s30  ;;  %s1183_s18 = smov %s940_s19 }
 0x241   : > { %s1184_s19 = smov %s1186_s13  ;;  %21 = sbr.rel (!%p19_p9) target bundleno = 7 (0x7), region = 106 }
 0x246   :  { %546 = vsyncpa [#allocation3], 1 }
 0x247   :  { %548 = vsyncpa [#allocation3 + $0x1], 1 }
 0x248   :  { %549 = vsyncpa [#allocation6], 1 }
 0x249   :  { %550 = vsyncpa [#allocation4], 1 }
 0x24a   :  { %552 = vsyncpa [#allocation4 + $0x1], 1 }

</bundles_post_ra>
